<compile_context>
chip_gen: v7x
topology: tpu7x:2x2x1
jax: 0.10.0
libtpu: 0.0.40
codegen_flags: <defaults>
</compile_context>

<pallas_src>
import functools

import jax
import jax.numpy as jnp
from jax.experimental import pallas as pl
from jax.experimental.pallas import tpu as pltpu


def _round_up(x, m):
    return ((x + m - 1) // m) * m


def _lstm_seq_kernel(xw_ref, h0_ref, c0_ref, w_hh_ref,
                     h_seq_ref, c_out_ref, h_s, c_s,
                     *, hidden_pad, matmul_dtype):
    """One timestep of the LSTM recurrence (grid axis 0 = time, sequential).

    xw_ref   : (1, Bp, 4*Hp)  precomputed x@W_ih^T + b for this step (f32)
    h0_ref   : (Bp, Hp)       initial hidden state (f32, VMEM-resident)
    c0_ref   : (Bp, Hp)       initial cell state   (f32, VMEM-resident)
    w_hh_ref : (Hp, 4*Hp)     recurrent weight, VMEM-resident across all steps
    h_seq_ref: (1, Bp, Hp)    per-step hidden output (lane-dense, Hp >= 128)
    c_out_ref: (Bp, Hp)       final cell state (written on the last step)
    h_s, c_s : (Bp, Hp) f32   VMEM scratch carrying the recurrent state
    """
    t = pl.program_id(0)
    Hp = hidden_pad

    @pl.when(t == 0)
    def _():
        h_s[...] = h0_ref[...]
        c_s[...] = c0_ref[...]

    # gates = (x@W_ih^T + b) + h@W_hh^T  -> (Bp, 4*Hp), f32 accumulation (MXU).
    gates = xw_ref[0] + jnp.dot(
        h_s[...].astype(matmul_dtype), w_hh_ref[...],
        preferred_element_type=jnp.float32)

    # Each gate sits on its own 128-lane-aligned block of the 4*Hp axis
    # (PyTorch LSTMCell gate order: i, f, g, o).  sigmoid/tanh lower to the
    # EUP slot, so they overlap with the MXU/VPU work.
    i_g = jax.nn.sigmoid(gates[:, 0 * Hp:1 * Hp])
    f_g = jax.nn.sigmoid(gates[:, 1 * Hp:2 * Hp])
    g_g = jnp.tanh(gates[:, 2 * Hp:3 * Hp])
    o_g = jax.nn.sigmoid(gates[:, 3 * Hp:4 * Hp])

    c_new = f_g * c_s[...] + i_g * g_g
    h_new = o_g * jnp.tanh(c_new)

    h_s[...] = h_new
    c_s[...] = c_new
    h_seq_ref[0] = h_new.astype(h_seq_ref.dtype)

    @pl.when(t == pl.num_programs(0) - 1)
    def _():
        c_out_ref[...] = c_new.astype(c_out_ref.dtype)


@functools.partial(jax.jit, static_argnames=("out_dim", "matmul_dtype"))
def lstm_sequence_pallas(xs, h0, c0, w_ih_t, w_hh_t, bias,
                         *, out_dim, matmul_dtype):
    """Run T LSTMCell steps in a single pallas_call.

    xs: (T, B, I); h0, c0: (B, H) f32.
    w_ih_t: (I, 4*Hp), w_hh_t: (Hp, 4*Hp) in matmul_dtype; bias: (1, 4*Hp) f32.
    Returns (h_seq (T, B, H) f32, c_final (B, H) f32).
    """
    T, B, I = xs.shape
    Hp = w_hh_t.shape[0]
    Bp = _round_up(B, 8)

    # --- Input projection for the whole sequence: one big batched matmul
    # outside the recurrence (no sequential dependence). f32 accumulation.
    xw = jnp.dot(xs.reshape(T * B, I).astype(matmul_dtype), w_ih_t,
                 preferred_element_type=jnp.float32) + bias
    xw = xw.reshape(T, B, 4 * Hp)
    if Bp != B:
        xw = jnp.pad(xw, ((0, 0), (0, Bp - B), (0, 0)))

    # Pad the carried state to (Bp, Hp); padded rows/lanes stay zero and do
    # not influence real outputs (padded W_hh rows/cols are zero).
    h0p = jnp.zeros((Bp, Hp), jnp.float32).at[:B, :out_dim].set(
        h0.astype(jnp.float32))
    c0p = jnp.zeros((Bp, Hp), jnp.float32).at[:B, :out_dim].set(
        c0.astype(jnp.float32))

    kernel = functools.partial(_lstm_seq_kernel, hidden_pad=Hp,
                               matmul_dtype=matmul_dtype)

    h_seq, c_fin = pl.pallas_call(
        kernel,
        out_shape=(
            jax.ShapeDtypeStruct((T, Bp, Hp), jnp.float32),
            jax.ShapeDtypeStruct((Bp, Hp), jnp.float32),
        ),
        grid_spec=pltpu.PrefetchScalarGridSpec(
            num_scalar_prefetch=0,
            grid=(T,),
            in_specs=[
                # per-step slice of the precomputed input projection
                pl.BlockSpec((1, Bp, 4 * Hp), lambda t: (t, 0, 0)),
                # initial state + recurrent weights: block index ignores t
                # -> DMA'd once, VMEM-resident for the whole sequence.
                pl.BlockSpec((Bp, Hp), lambda t: (0, 0)),
                pl.BlockSpec((Bp, Hp), lambda t: (0, 0)),
                pl.BlockSpec((Hp, 4 * Hp), lambda t: (0, 0)),
            ],
            out_specs=(
                pl.BlockSpec((1, Bp, Hp), lambda t: (t, 0, 0)),
                pl.BlockSpec((Bp, Hp), lambda t: (0, 0)),
            ),
            scratch_shapes=[
                pltpu.VMEM((Bp, Hp), jnp.float32),  # h carry
                pltpu.VMEM((Bp, Hp), jnp.float32),  # c carry (always f32)
            ],
        ),
        compiler_params=pltpu.CompilerParams(
            dimension_semantics=("arbitrary",)),  # sequential recurrence
    )(xw, h0p, c0p, w_hh_t)

    return h_seq[:, :B, :out_dim], c_fin[:B, :out_dim]


class StateLSTMPallas:
    """Mirrors the PyTorch StateLSTM module: keeps (a, c) state across calls."""

    def __init__(self, in_dim, out_dim, key, matmul_dtype=jnp.float32):
        self.in_dim = in_dim
        self.out_dim = out_dim
        self.matmul_dtype = matmul_dtype

        k1, k2, k3, k4 = jax.random.split(key, 4)
        bound = 1.0 / float(jnp.sqrt(out_dim))
        # Raw nn.LSTMCell-shaped parameters (kept for the pure-JAX reference).
        self.w_ih = jax.random.uniform(k1, (4 * out_dim, in_dim),
                                       minval=-bound, maxval=bound,
                                       dtype=jnp.float32)
        self.w_hh = jax.random.uniform(k2, (4 * out_dim, out_dim),
                                       minval=-bound, maxval=bound,
                                       dtype=jnp.float32)
        self.b_ih = jax.random.uniform(k3, (4 * out_dim,),
                                       minval=-bound, maxval=bound,
                                       dtype=jnp.float32)
        self.b_hh = jax.random.uniform(k4, (4 * out_dim,),
                                       minval=-bound, maxval=bound,
                                       dtype=jnp.float32)

        # --- One-time layout work: transpose weights, fold biases, pad the
        # hidden dim to a 128-lane multiple and place each gate on its own
        # 128-aligned block of the 4*Hp axis.
        H, Hp = out_dim, _round_up(out_dim, 128)
        self.hidden_pad = Hp
        w_ih_t = jnp.zeros((in_dim, 4 * Hp), jnp.float32)
        w_hh_t = jnp.zeros((Hp, 4 * Hp), jnp.float32)
        bias = jnp.zeros((1, 4 * Hp), jnp.float32)
        b_sum = self.b_ih + self.b_hh
        for g in range(4):
            w_ih_t = w_ih_t.at[:, g * Hp:g * Hp + H].set(
                self.w_ih[g * H:(g + 1) * H, :].T)
            w_hh_t = w_hh_t.at[:H, g * Hp:g * Hp + H].set(
                self.w_hh[g * H:(g + 1) * H, :].T)
            bias = bias.at[:, g * Hp:g * Hp + H].set(b_sum[g * H:(g + 1) * H])
        self.w_ih_t = w_ih_t.astype(matmul_dtype)   # (I, 4*Hp)
        self.w_hh_t = w_hh_t.astype(matmul_dtype)   # (Hp, 4*Hp)
        self.bias = bias                            # (1, 4*Hp), f32

        self.a = None
        self.c = None

    def reset_state(self):
        self.a = None
        self.c = None

    def _ensure_state(self, batch):
        if self.a is None:
            # Cell/hidden state always carried in f32 (matches PyTorch).
            self.a = jnp.zeros((batch, self.out_dim), jnp.float32)
            self.c = jnp.zeros((batch, self.out_dim), jnp.float32)

    def __call__(self, x):
        """One step (same semantics as the PyTorch forward): x is (B, I)."""
        self._ensure_state(x.shape[0])
        h_seq, c_fin = lstm_sequence_pallas(
            x[None], self.a, self.c, self.w_ih_t, self.w_hh_t, self.bias,
            out_dim=self.out_dim, matmul_dtype=self.matmul_dtype)
        self.a = h_seq[0]
        self.c = c_fin
        return self.a

    def forward_sequence(self, xs):
        """T steps fused into one pallas_call. xs: (T, B, I); returns (T, B, H)."""
        self._ensure_state(xs.shape[1])
        h_seq, c_fin = lstm_sequence_pallas(
            xs, self.a, self.c, self.w_ih_t, self.w_hh_t, self.bias,
            out_dim=self.out_dim, matmul_dtype=self.matmul_dtype)
        self.a = h_seq[-1]
        self.c = c_fin
        return h_seq


def _lstm_cell_ref(x, h, c, w_ih, w_hh, b_ih, b_hh):
    """Pure-JAX reference of torch.nn.LSTMCell for correctness checking."""
    gates = x @ w_ih.T + b_ih + h @ w_hh.T + b_hh
    H = h.shape[1]
    i = jax.nn.sigmoid(gates[:, 0 * H:1 * H])
    f = jax.nn.sigmoid(gates[:, 1 * H:2 * H])
    g = jnp.tanh(gates[:, 2 * H:3 * H])
    o = jax.nn.sigmoid(gates[:, 3 * H:4 * H])
    c_new = f * c + i * g
    h_new = o * jnp.tanh(c_new)
    return h_new, c_new


if __name__ == "__main__":
    key = jax.random.PRNGKey(0)
    k_param, k_x = jax.random.split(key)

    batch, in_dim, out_dim, seq = 4, 16, 32, 6
    xs = jax.random.normal(k_x, (seq, batch, in_dim), dtype=jnp.float32)

    # ---- f32 matmul path: tight check against the pure-JAX reference.
    model = StateLSTMPallas(in_dim, out_dim, k_param, matmul_dtype=jnp.float32)

    # (a) step-by-step calls (exact PyTorch StateLSTM usage pattern).
    step_outs = jnp.stack([model(xs[t]) for t in range(seq)])
    jax.block_until_ready(step_outs)

    # (b) fused sequence: one pallas_call over all timesteps.
    model.reset_state()
    seq_outs = model.forward_sequence(xs)
    jax.block_until_ready(seq_outs)

    # Pure-JAX reference loop.
    h = jnp.zeros((batch, out_dim), jnp.float32)
    c = jnp.zeros((batch, out_dim), jnp.float32)
    ref_outs = []
    for t in range(seq):
        h, c = _lstm_cell_ref(xs[t], h, c, model.w_ih, model.w_hh,
                              model.b_ih, model.b_hh)
        ref_outs.append(h)
    ref_outs = jnp.stack(ref_outs)

    assert jnp.allclose(step_outs, ref_outs, atol=1e-5, rtol=1e-5)
    assert jnp.allclose(seq_outs, ref_outs, atol=1e-5, rtol=1e-5)
    assert jnp.allclose(model.c, c, atol=1e-5, rtol=1e-5)

    # ---- bf16 matmul path (same params): f32 accumulation + f32 cell state
    # keep the drift small; loose tolerance against the f32 reference.
    model_bf16 = StateLSTMPallas(in_dim, out_dim, k_param,
                                 matmul_dtype=jnp.bfloat16)
    seq_outs_bf16 = model_bf16.forward_sequence(xs)
    jax.block_until_ready(seq_outs_bf16)
    assert jnp.allclose(seq_outs_bf16, ref_outs, atol=5e-2, rtol=0.0)

    print("KERNEL_OK")
</pallas_src>

<mosaic_0001>
module attributes {stable_mosaic.version = 11 : i64} {
  func.func @_lstm_seq_kernel(%arg0: i32, %arg1: memref<1x8x512xf32, #tpu.memory_space<vmem>>, %arg2: memref<8x128xf32, #tpu.memory_space<vmem>>, %arg3: memref<8x128xf32, #tpu.memory_space<vmem>>, %arg4: memref<128x512xf32, #tpu.memory_space<vmem>>, %arg5: memref<1x8x128xf32, #tpu.memory_space<vmem>>, %arg6: memref<8x128xf32, #tpu.memory_space<vmem>>, %arg7: memref<8x128xf32, #tpu.memory_space<vmem>>, %arg8: memref<8x128xf32, #tpu.memory_space<vmem>>) attributes {dimension_semantics = [#tpu.dimension_semantics<arbitrary>], iteration_bounds = array<i64: 1>, scalar_prefetch = 0 : i64, scratch_operands = 2 : i64, tpu.core_type = #tpu.core_type<tc>, window_params = [{transform_indices = @transform_0, window_bounds = array<i64: 1, 8, 512>}, {pipeline_mode = #tpu.pipeline_mode<synchronous>, transform_indices = @transform_1, window_bounds = array<i64: 8, 128>}, {pipeline_mode = #tpu.pipeline_mode<synchronous>, transform_indices = @transform_2, window_bounds = array<i64: 8, 128>}, {pipeline_mode = #tpu.pipeline_mode<synchronous>, transform_indices = @transform_3, window_bounds = array<i64: 128, 512>}, {transform_indices = @transform_4, window_bounds = array<i64: 1, 8, 128>}, {pipeline_mode = #tpu.pipeline_mode<synchronous>, transform_indices = @transform_5, window_bounds = array<i64: 8, 128>}]} {
    %c0_i32 = arith.constant 0 : i32
    %0 = arith.cmpi eq, %arg0, %c0_i32 : i32
    %1 = arith.extui %0 : i1 to i32
    %c0_i32_0 = arith.constant 0 : i32
    %2 = arith.cmpi ne, %1, %c0_i32_0 : i32
    scf.if %2 {
      %c0_21 = arith.constant 0 : index
      %c0_22 = arith.constant 0 : index
      %43 = vector.load %arg2[%c0_21, %c0_22] : memref<8x128xf32, #tpu.memory_space<vmem>>, vector<8x128xf32>
      %c0_23 = arith.constant 0 : index
      %c0_24 = arith.constant 0 : index
      %44 = vector.load %arg7[%c0_23, %c0_24] : memref<8x128xf32, #tpu.memory_space<vmem>>, vector<8x128xf32>
      tpu.vector_store %arg7[%c0_23, %c0_24], %43 {strides = array<i32>} : memref<8x128xf32, #tpu.memory_space<vmem>>, vector<8x128xf32>,
      %c0_25 = arith.constant 0 : index
      %c0_26 = arith.constant 0 : index
      %45 = vector.load %arg3[%c0_25, %c0_26] : memref<8x128xf32, #tpu.memory_space<vmem>>, vector<8x128xf32>
      %c0_27 = arith.constant 0 : index
      %c0_28 = arith.constant 0 : index
      %46 = vector.load %arg8[%c0_27, %c0_28] : memref<8x128xf32, #tpu.memory_space<vmem>>, vector<8x128xf32>
      tpu.vector_store %arg8[%c0_27, %c0_28], %45 {strides = array<i32>} : memref<8x128xf32, #tpu.memory_space<vmem>>, vector<8x128xf32>,
    } else {
    }
    %c0 = arith.constant 0 : index
    %c0_1 = arith.constant 0 : index
    %c0_2 = arith.constant 0 : index
    %3 = vector.load %arg1[%c0, %c0_1, %c0_2] : memref<1x8x512xf32, #tpu.memory_space<vmem>>, vector<1x8x512xf32>
    %4 = vector.shape_cast %3 : vector<1x8x512xf32> to vector<8x512xf32>
    %c0_3 = arith.constant 0 : index
    %c0_4 = arith.constant 0 : index
    %5 = vector.load %arg7[%c0_3, %c0_4] : memref<8x128xf32, #tpu.memory_space<vmem>>, vector<8x128xf32>
    %c0_5 = arith.constant 0 : index
    %c0_6 = arith.constant 0 : index
    %6 = vector.load %arg4[%c0_5, %c0_6] : memref<128x512xf32, #tpu.memory_space<vmem>>, vector<128x512xf32>
    %cst = arith.constant dense<0.000000e+00> : vector<8x512xf32>
    %7 = tpu.matmul %5, %6, %cst {dimension_numbers = #tpu.dot_dimension_numbers<[1], [0], [0], [1], [0, 0, 1, 1], [], []>} : vector<8x128xf32>, vector<128x512xf32>, vector<8x512xf32> -> vector<8x512xf32>
    %8 = arith.addf %4, %7 : vector<8x512xf32>
    %9 = vector.extract_strided_slice %8 {offsets = [0, 0], sizes = [8, 128], strides = [1, 1]} : vector<8x512xf32> to vector<8x128xf32>
    %10 = arith.negf %9 : vector<8x128xf32>
    %11 = math.exp %10 : vector<8x128xf32>
    %cst_7 = arith.constant 1.000000e+00 : f32
    %12 = vector.broadcast %cst_7 : f32 to vector<8x128xf32>
    %13 = arith.addf %12, %11 : vector<8x128xf32>
    %14 = arith.divf %12, %13 : vector<8x128xf32>
    %15 = vector.extract_strided_slice %8 {offsets = [0, 128], sizes = [8, 128], strides = [1, 1]} : vector<8x512xf32> to vector<8x128xf32>
    %16 = arith.negf %15 : vector<8x128xf32>
    %17 = math.exp %16 : vector<8x128xf32>
    %cst_8 = arith.constant 1.000000e+00 : f32
    %18 = vector.broadcast %cst_8 : f32 to vector<8x128xf32>
    %19 = arith.addf %18, %17 : vector<8x128xf32>
    %20 = arith.divf %18, %19 : vector<8x128xf32>
    %21 = vector.extract_strided_slice %8 {offsets = [0, 256], sizes = [8, 128], strides = [1, 1]} : vector<8x512xf32> to vector<8x128xf32>
    %22 = math.tanh %21 : vector<8x128xf32>
    %23 = vector.extract_strided_slice %8 {offsets = [0, 384], sizes = [8, 128], strides = [1, 1]} : vector<8x512xf32> to vector<8x128xf32>
    %24 = arith.negf %23 : vector<8x128xf32>
    %25 = math.exp %24 : vector<8x128xf32>
    %cst_9 = arith.constant 1.000000e+00 : f32
    %26 = vector.broadcast %cst_9 : f32 to vector<8x128xf32>
    %27 = arith.addf %26, %25 : vector<8x128xf32>
    %28 = arith.divf %26, %27 : vector<8x128xf32>
    %c0_10 = arith.constant 0 : index
    %c0_11 = arith.constant 0 : index
    %29 = vector.load %arg8[%c0_10, %c0_11] : memref<8x128xf32, #tpu.memory_space<vmem>>, vector<8x128xf32>
    %30 = arith.mulf %20, %29 : vector<8x128xf32>
    %31 = arith.mulf %14, %22 : vector<8x128xf32>
    %32 = arith.addf %30, %31 : vector<8x128xf32>
    %33 = math.tanh %32 : vector<8x128xf32>
    %34 = arith.mulf %28, %33 : vector<8x128xf32>
    %c0_12 = arith.constant 0 : index
    %c0_13 = arith.constant 0 : index
    %35 = vector.load %arg7[%c0_12, %c0_13] : memref<8x128xf32, #tpu.memory_space<vmem>>, vector<8x128xf32>
    tpu.vector_store %arg7[%c0_12, %c0_13], %34 {strides = array<i32>} : memref<8x128xf32, #tpu.memory_space<vmem>>, vector<8x128xf32>,
    %c0_14 = arith.constant 0 : index
    %c0_15 = arith.constant 0 : index
    %36 = vector.load %arg8[%c0_14, %c0_15] : memref<8x128xf32, #tpu.memory_space<vmem>>, vector<8x128xf32>
    tpu.vector_store %arg8[%c0_14, %c0_15], %32 {strides = array<i32>} : memref<8x128xf32, #tpu.memory_space<vmem>>, vector<8x128xf32>,
    %c0_16 = arith.constant 0 : index
    %c0_17 = arith.constant 0 : index
    %c0_18 = arith.constant 0 : index
    %37 = vector.load %arg5[%c0_16, %c0_17, %c0_18] : memref<1x8x128xf32, #tpu.memory_space<vmem>>, vector<1x8x128xf32>
    %38 = vector.shape_cast %37 : vector<1x8x128xf32> to vector<8x128xf32>
    %39 = vector.shape_cast %34 : vector<8x128xf32> to vector<1x8x128xf32>
    tpu.vector_store %arg5[%c0_16, %c0_17, %c0_18], %39 {strides = array<i32>} : memref<1x8x128xf32, #tpu.memory_space<vmem>>, vector<1x8x128xf32>,
    %c0_i32_19 = arith.constant 0 : i32
    %40 = arith.cmpi eq, %arg0, %c0_i32_19 : i32
    %41 = arith.extui %40 : i1 to i32
    %c0_i32_20 = arith.constant 0 : i32
    %42 = arith.cmpi ne, %41, %c0_i32_20 : i32
    scf.if %42 {
      %c0_21 = arith.constant 0 : index
      %c0_22 = arith.constant 0 : index
      %43 = vector.load %arg6[%c0_21, %c0_22] : memref<8x128xf32, #tpu.memory_space<vmem>>, vector<8x128xf32>
      tpu.vector_store %arg6[%c0_21, %c0_22], %32 {strides = array<i32>} : memref<8x128xf32, #tpu.memory_space<vmem>>, vector<8x128xf32>,
    } else {
    }
    return
  }
  func.func @transform_0(%arg0: i32) -> (i32, i32, i32) {
    %c0_i32 = arith.constant 0 : i32
    %c0_i32_0 = arith.constant 0 : i32
    %c0_i32_1 = arith.constant 0 : i32
    return %arg0, %c0_i32, %c0_i32_0 : i32, i32, i32
  }
  func.func @transform_1(%arg0: i32) -> (i32, i32) {
    %c0_i32 = arith.constant 0 : i32
    %c0_i32_0 = arith.constant 0 : i32
    %c0_i32_1 = arith.constant 0 : i32
    return %c0_i32, %c0_i32_0 : i32, i32
  }
  func.func @transform_2(%arg0: i32) -> (i32, i32) {
    %c0_i32 = arith.constant 0 : i32
    %c0_i32_0 = arith.constant 0 : i32
    %c0_i32_1 = arith.constant 0 : i32
    return %c0_i32, %c0_i32_0 : i32, i32
  }
  func.func @transform_3(%arg0: i32) -> (i32, i32) {
    %c0_i32 = arith.constant 0 : i32
    %c0_i32_0 = arith.constant 0 : i32
    %c0_i32_1 = arith.constant 0 : i32
    return %c0_i32, %c0_i32_0 : i32, i32
  }
  func.func @transform_4(%arg0: i32) -> (i32, i32, i32) {
    %c0_i32 = arith.constant 0 : i32
    %c0_i32_0 = arith.constant 0 : i32
    %c0_i32_1 = arith.constant 0 : i32
    return %arg0, %c0_i32, %c0_i32_0 : i32, i32, i32
  }
  func.func @transform_5(%arg0: i32) -> (i32, i32) {
    %c0_i32 = arith.constant 0 : i32
    %c0_i32_0 = arith.constant 0 : i32
    %c0_i32_1 = arith.constant 0 : i32
    return %c0_i32, %c0_i32_0 : i32, i32
  }
}

</mosaic_0001>

<bundles_post_ra>
// kernel: lstm_sequence_pallas.1
= control target key start
LH: loop header
LB: loop body
LE: loop exit
PB: predicated region body
PF: predicated region fallthrough
CT: control target
= control target key end

     0   :  { %11 = vsyncpa [#allocation5], 0  ;;  %s408_s18 = smov [#allocation4]   ;;  %s478_s0 = inlined_call_operand.vmem [shape: f32[1,8,512], index: 0, kind: input, shape index: {}]   ;;  %s479_s1 = inlined_call_operand.vmem [shape: f32[8,128], index: 1, kind: input, shape index: {}]   ;;  %s480_s2 = inlined_call_operand.vmem [shape: f32[8,128], index: 2, kind: input, shape index: {}]   ;;  %s481_s3 = inlined_call_operand.hbm [shape: f32[128,512], index: 3, kind: input, shape index: {}]   ;;  %s482_s4 = inlined_call_operand.vmem [shape: f32[1,8,128], index: 4, kind: output, shape index: {0}]   ;;  %s483_s5 = inlined_call_operand.vmem [shape: f32[8,128], index: 5, kind: output, shape index: {1}]  }
   0x1   :  { %s23_s19 = sshll.u32 %s408_s18, 4  ;;  %s384_s22 = scalar_lea.hbm %s481_s3, 8192  ;;  %s24_s19 = int_to_ptr.vmem [resolvable:$true] %s23_s19 }
   0x2   :  { %p385_p0 = scmp.ne.s32.totalorder %s481_s3, %s384_s22  ;;  %p388_p1 = scmp.lt.u32.totalorder %s384_s22, %s481_s3 }
   0x4   :  { %p390_p2 = pnand %p388_p1, %p385_p0 }
   0x6   :  { %393 = shalt.err (!%p390_p2)
}
   0x7   :  { %s394_s27 = scalar_lea.vmem %s24_s19, 8192  ;;  %p399_p4 = scmp.lt.s32.totalorder %s24_s19, %s24_s19 }
   0x8   :  { %p395_p3 = scmp.ne.s32.totalorder %s24_s19, %s394_s27  ;;  %p400_p5 = scmp.lt.s32.totalorder %s394_s27, %s394_s27 }
   0xa   :  { %p401_p6 = por %p400_p5, %p399_p4 }
   0xc   :  { %p402_p7 = pnand %p401_p6, %p395_p3 }
   0xe   :  { %405 = shalt.err (!%p402_p7)
}
   0xf   :  { %s409_s28 = smov 512   ;;  %s410_s29 = smov 32  }
  0x10   :  { %29 = dma.hbm_to_vmem [thread:$0]  %s481_s3, 8192, %s24_s19, [#allocation5], %s409_s28, %s409_s28, %s410_s29  }
  0x11   :  { %406 = dma.done.wait [#allocation5], 8192  }
  0x12   :  { %407 = vsyncadd [#allocation5], 4294959104  ;;  %v411_v0 = vmov 0.0   ;;  %v47_v1 = vld [vmem:[#allocation4 + $0x8] sm:$0xff]  ;;  %v46_v3 = vld [vmem:[#allocation4] sm:$0xff] }
  0x13   :  { %174 = vmatprep.mubr.f32.mxu0 %v411_v0  ;;  %245 = vmatprep.mubr.f32.mxu1 %v411_v0  ;;  %v51_v2 = vld [vmem:[#allocation4 + $0x28] sm:$0xff]  ;;  %v50_v5 = vld [vmem:[#allocation4 + $0x20] sm:$0xff]  ;;  %v49_v19 = vld [vmem:[#allocation4 + $0x18] sm:$0xff] }
  0x14   :  { %v300_v4 = vpack.c.bf16 %v51_v2, %v47_v1  ;;  %v55_v6 = vld [vmem:[#allocation4 + $0x48] sm:$0xff]  ;;  %v302_v8 = vpack.c.bf16 %v50_v5, %v46_v3  ;;  %v54_v10 = vld [vmem:[#allocation4 + $0x40] sm:$0xff]  ;;  %v53_v20 = vld [vmem:[#allocation4 + $0x38] sm:$0xff] }
  0x15   :  { %v59_v7 = vld [vmem:[#allocation4 + $0x68] sm:$0xff]  ;;  %v58_v11 = vld [vmem:[#allocation4 + $0x60] sm:$0xff]  ;;  %v332_v22 = vpack.c.bf16 %v53_v20, %v49_v19  ;;  %v48_v23 = vld [vmem:[#allocation4 + $0x10] sm:$0xff] }
  0x16   :  { %v304_v9 = vpack.c.bf16 %v59_v7, %v55_v6  ;;  %v63_v12 = vld [vmem:[#allocation4 + $0x88] sm:$0xff]  ;;  %301 = vmatprep.subr.bf16.mxu0 %v300_v4  ;;  %v306_v14 = vpack.c.bf16 %v58_v11, %v54_v10  ;;  %v62_v15 = vld [vmem:[#allocation4 + $0x80] sm:$0xff]  ;;  %v52_v24 = vld [vmem:[#allocation4 + $0x30] sm:$0xff] }
  0x17   :  { %v67_v13 = vld [vmem:[#allocation4 + $0xa8] sm:$0xff]  ;;  %303 = vmatpush1.bf16.msra.mxu0 %v302_v8  ;;  %v66_v16 = vld [vmem:[#allocation4 + $0xa0] sm:$0xff]  ;;  %v334_v25 = vpack.c.bf16 %v52_v24, %v48_v23  ;;  %333 = vmatprep.subr.bf16.mxu1 %v332_v22  ;;  %v57_v27 = vld [vmem:[#allocation4 + $0x58] sm:$0xff] }
  0x18   :  { %305 = vmatprep.subr.bf16.mxu0 %v304_v9  ;;  %v308_v17 = vpack.c.bf16 %v67_v13, %v63_v12  ;;  %v71_v18 = vld [vmem:[#allocation4 + $0xc8] sm:$0xff]  ;;  %v310_v26 = vpack.c.bf16 %v66_v16, %v62_v15  ;;  %v61_v28 = vld [vmem:[#allocation4 + $0x78] sm:$0xff]  ;;  %v56_v29 = vld [vmem:[#allocation4 + $0x50] sm:$0xff] }
  0x19   :  { %v75_v21 = vld [vmem:[#allocation4 + $0xe8] sm:$0xff]  ;;  %v70_v31 = vld [vmem:[#allocation4 + $0xc0] sm:$0xff]  ;;  %335 = vmatpush1.bf16.msra.mxu1 %v334_v25  ;;  %v336_v33 = vpack.c.bf16 %v61_v28, %v57_v27  ;;  %v60_v34 = vld [vmem:[#allocation4 + $0x70] sm:$0xff] }
  0x1a   :  { %v312_v30 = vpack.c.bf16 %v75_v21, %v71_v18  ;;  %v74_v32 = vld [vmem:[#allocation4 + $0xe0] sm:$0xff]  ;;  %v79_v35 = vld [vmem:[#allocation4 + $0x108] sm:$0xff]  ;;  %v338_v37 = vpack.c.bf16 %v60_v34, %v56_v29  ;;  %v65_v38 = vld [vmem:[#allocation4 + $0x98] sm:$0xff] }
  0x1b   :  { %307 = vmatpush1.bf16.msra.mxu0 %v306_v14  ;;  %v83_v36 = vld [vmem:[#allocation4 + $0x128] sm:$0xff]  ;;  %337 = vmatprep.subr.bf16.mxu1 %v336_v33  ;;  %v69_v39 = vld [vmem:[#allocation4 + $0xb8] sm:$0xff]  ;;  %v64_v40 = vld [vmem:[#allocation4 + $0x90] sm:$0xff]  ;;  %v314_v42 = vpack.c.bf16 %v74_v32, %v70_v31 }
  0x1c   :  { %309 = vmatprep.subr.bf16.mxu0 %v308_v17  ;;  %v68_v41 = vld [vmem:[#allocation4 + $0xb0] sm:$0xff]  ;;  %v78_v43 = vld [vmem:[#allocation4 + $0x100] sm:$0xff]  ;;  %v340_v45 = vpack.c.bf16 %v69_v39, %v65_v38  ;;  %v316_v46 = vpack.c.bf16 %v83_v36, %v79_v35  ;;  %v87_v47 = vld [vmem:[#allocation4 + $0x148] sm:$0xff] }
  0x1d   :  { %v82_v44 = vld [vmem:[#allocation4 + $0x120] sm:$0xff]  ;;  %339 = vmatpush1.bf16.msra.mxu1 %v338_v37  ;;  %v342_v48 = vpack.c.bf16 %v68_v41, %v64_v40  ;;  %v73_v49 = vld [vmem:[#allocation4 + $0xd8] sm:$0xff]  ;;  %v91_v51 = vld [vmem:[#allocation4 + $0x168] sm:$0xff] }
  0x1e   :  { %v77_v50 = vld [vmem:[#allocation4 + $0xf8] sm:$0xff]  ;;  %341 = vmatprep.subr.bf16.mxu1 %v340_v45  ;;  %v72_v53 = vld [vmem:[#allocation4 + $0xd0] sm:$0xff]  ;;  %v318_v55 = vpack.c.bf16 %v82_v44, %v78_v43  ;;  %v320_v58 = vpack.c.bf16 %v91_v51, %v87_v47  ;;  %v86_v59 = vld [vmem:[#allocation4 + $0x140] sm:$0xff] }
  0x1f   :  { %311 = vmatpush1.bf16.msra.mxu0 %v310_v26  ;;  %v344_v52 = vpack.c.bf16 %v77_v50, %v73_v49  ;;  %v76_v54 = vld [vmem:[#allocation4 + $0xf0] sm:$0xff]  ;;  %v81_v56 = vld [vmem:[#allocation4 + $0x118] sm:$0xff]  ;;  %v90_v60 = vld [vmem:[#allocation4 + $0x160] sm:$0xff] }
  0x20   :  { %313 = vmatprep.subr.bf16.mxu0 %v312_v30  ;;  %v85_v57 = vld [vmem:[#allocation4 + $0x138] sm:$0xff]  ;;  %v95_v61 = vld [vmem:[#allocation4 + $0x188] sm:$0xff]  ;;  %v346_v62 = vpack.c.bf16 %v76_v54, %v72_v53  ;;  %v80_v1 = vld [vmem:[#allocation4 + $0x110] sm:$0xff]  ;;  %v322_v5 = vpack.c.bf16 %v90_v60, %v86_v59 }
  0x21   :  { %343 = vmatpush1.bf16.msra.mxu1 %v342_v48  ;;  %v99_v63 = vld [vmem:[#allocation4 + $0x1a8] sm:$0xff]  ;;  %v348_v0 = vpack.c.bf16 %v85_v57, %v81_v56  ;;  %v84_v2 = vld [vmem:[#allocation4 + $0x130] sm:$0xff]  ;;  %v89_v3 = vld [vmem:[#allocation4 + $0x158] sm:$0xff] }
  0x22   :  { %345 = vmatprep.subr.bf16.mxu1 %v344_v52  ;;  %v93_v4 = vld [vmem:[#allocation4 + $0x178] sm:$0xff]  ;;  %v324_v6 = vpack.c.bf16 %v99_v63, %v95_v61  ;;  %v94_v7 = vld [vmem:[#allocation4 + $0x180] sm:$0xff]  ;;  %v103_v9 = vld [vmem:[#allocation4 + $0x1c8] sm:$0xff]  ;;  %v350_v10 = vpack.c.bf16 %v84_v2, %v80_v1 }
  0x23   :  { %315 = vmatpush1.bf16.msra.mxu0 %v314_v42  ;;  %v98_v8 = vld [vmem:[#allocation4 + $0x1a0] sm:$0xff]  ;;  %v107_v11 = vld [vmem:[#allocation4 + $0x1e8] sm:$0xff]  ;;  %v352_v12 = vpack.c.bf16 %v93_v4, %v89_v3  ;;  %v88_v13 = vld [vmem:[#allocation4 + $0x150] sm:$0xff] }
  0x24   :  { %317 = vmatprep.subr.bf16.mxu0 %v316_v46  ;;  %v92_v14 = vld [vmem:[#allocation4 + $0x170] sm:$0xff]  ;;  %v97_v15 = vld [vmem:[#allocation4 + $0x198] sm:$0xff]  ;;  %v326_v17 = vpack.c.bf16 %v98_v8, %v94_v7  ;;  %v328_v18 = vpack.c.bf16 %v107_v11, %v103_v9  ;;  %v102_v19 = vld [vmem:[#allocation4 + $0x1c0] sm:$0xff] }
  0x25   :  { %347 = vmatpush1.bf16.msra.mxu1 %v346_v62  ;;  %v101_v16 = vld [vmem:[#allocation4 + $0x1b8] sm:$0xff]  ;;  %v106_v20 = vld [vmem:[#allocation4 + $0x1e0] sm:$0xff]  ;;  %v354_v21 = vpack.c.bf16 %v92_v14, %v88_v13  ;;  %v96_v23 = vld [vmem:[#allocation4 + $0x190] sm:$0xff] }
  0x26   :  { %349 = vmatprep.subr.bf16.mxu1 %v348_v0  ;;  %v356_v22 = vpack.c.bf16 %v101_v16, %v97_v15  ;;  %v100_v24 = vld [vmem:[#allocation4 + $0x1b0] sm:$0xff]  ;;  %v105_v25 = vld [vmem:[#allocation4 + $0x1d8] sm:$0xff]  ;;  %v330_v27 = vpack.c.bf16 %v106_v20, %v102_v19  ;;  %v37_v32 = vld [vmem:[%s479_s1] sm:$0xff] }
  0x27   :  { %319 = vmatpush1.bf16.msra.mxu0 %v318_v55  ;;  %v109_v26 = vld [vmem:[#allocation4 + $0x1f8] sm:$0xff]  ;;  %v358_v28 = vpack.c.bf16 %v100_v24, %v96_v23  ;;  %v104_v30 = vld [vmem:[#allocation4 + $0x1d0] sm:$0xff]  ;;  %v41_v34 = vld [vmem:[%s478_s0] sm:$0xff] }
  0x28   :  { %321 = vmatprep.subr.bf16.mxu0 %v320_v58  ;;  %v360_v29 = vpack.c.bf16 %v109_v26, %v105_v25  ;;  %v108_v31 = vld [vmem:[#allocation4 + $0x1f0] sm:$0xff]  ;;  %v42_v35 = vld [vmem:[%s478_s0 + $0x8] sm:$0xff]  ;;  %v44_v42 = vld [vmem:[%s478_s0 + $0x18] sm:$0xff] }
  0x29   :  { %351 = vmatpush1.bf16.msra.mxu1 %v350_v10  ;;  %v362_v33 = vpack.c.bf16 %v108_v31, %v104_v30  ;;  %v43_v46 = vld [vmem:[%s478_s0 + $0x10] sm:$0xff]  ;;  %v39_v55 = vld [vmem:[%s480_s2] sm:$0xff] }
  0x2a   :  { %353 = vmatprep.subr.bf16.mxu1 %v352_v12 }
  0x2b   :  { %323 = vmatpush1.bf16.msra.mxu0 %v322_v5 }
  0x2c   :  { %325 = vmatprep.subr.bf16.mxu0 %v324_v6 }
  0x2d   :  { %355 = vmatpush1.bf16.msra.mxu1 %v354_v21 }
  0x2e   :  { %357 = vmatprep.subr.bf16.mxu1 %v356_v22 }
  0x2f   :  { %327 = vmatpush1.bf16.msra.mxu0 %v326_v17 }
  0x30   :  { %329 = vmatprep.subr.bf16.mxu0 %v328_v18 }
  0x31   :  { %359 = vmatpush1.bf16.msra.mxu1 %v358_v28 }
  0x32   :  { %361 = vmatprep.subr.bf16.mxu1 %v360_v29 }
  0x33   :  { %331 = vmatpush1.bf16.msra.mxu0 %v330_v27 }
  0x35   :  { %363 = vmatpush1.bf16.msra.mxu1 %v362_v33 }
  0x36   :  { %175 = vmatmul.mubr.f32.vlgmr.msra.gmra.mrb[0].mxu0 %v37_v32 }
  0x38   :  { %246 = vmatmul.mubr.f32.vlgmr.msra.gmra.mrb[0].mxu1 %v37_v32 }
 0x109   :  { %v176_v36 = vpop.f32.mrb[0].mxu0 }
 0x10a   :  { %v252_v37 = vadd.f32 %v176_v36, %v41_v34  ;;  %v178_v38 = vpop.f32.mrb[1].mxu0 }
 0x10b   :  { %v253_v39 = vadd.f32 %v178_v38, %v42_v35  ;;  %v247_v43 = vpop.f32.mrb[0].mxu1 }
 0x10c   :  { %v297_v40 = vmul.f32 -1.442695, %v252_v37  ;;  %v249_v44 = vpop.f32.mrb[1].mxu1  ;;  %v254_v48 = vadd.f32 %v247_v43, %v43_v46 }
 0x10d   :  { %v298_v41 = vmul.f32 -1.442695, %v253_v39  ;;  %v255_v45 = vadd.f32 %v249_v44, %v44_v42 }
 0x10e   :  { %368 = vpow2.f32 %v297_v40 }
 0x10f   :  { %370 = vpow2.f32 %v298_v41  ;;  %v299_v47 = vmul.f32 -1.442695, %v255_v45 }
 0x111   :  { %372 = vpow2.f32 %v299_v47 }
 0x112   :  { %374 = vtanh.f32 %v254_v48 }
 0x118   :  { %v369_v49 = vpop.eup %368 }
 0x119   :  { %v371_v50 = vpop.eup %370  ;;  %v259_v51 = vadd.f32 1.0, %v369_v49 }
 0x11a   :  { %v265_v52 = vadd.f32 1.0, %v371_v50 }
 0x11b   :  { %376 = vrcp.f32 %v259_v51  ;;  %v373_v53 = vpop.eup %372 }
 0x11c   :  { %378 = vrcp.f32 %v265_v52  ;;  %v375_v54 = vpop.eup %374  ;;  %v272_v57 = vadd.f32 1.0, %v373_v53 }
 0x11e   :  { %380 = vrcp.f32 %v272_v57 }
 0x125   :  { %v377_v56 = vpop.eup %376 }
 0x126   :  { %v379_v58 = vpop.eup %378  ;;  %v277_v59 = vmul.f32 %v377_v56, %v375_v54 }
 0x127   :  { %v276_v60 = vmul.f32 %v379_v58, %v39_v55 }
 0x128   :  { %v381_v62 = vpop.eup %380 }
 0x129   :  { %v278_v61 = vadd.f32 %v277_v59, %v276_v60 }
 0x12b   :  { %382 = vtanh.f32 %v278_v61  ;;  %287 = vst [vmem:[%s483_s5] sm:$0xff] %v278_v61 }
 0x135   :  { %v383_v63 = vpop.eup %382 }
 0x136   :  { %v280_v0 = vmul.f32 %v383_v63, %v381_v62 }
 0x138   :  { %283 = vst [vmem:[%s482_s4] sm:$0xff] %v280_v0 }
 0x139   :  { %296 = vsyncpa [#allocation5], 1 }

</bundles_post_ra>
